<compile_context>
chip_gen: v7x
topology: tpu7x:2x2x1
jax: 0.10.0
libtpu: 0.0.40
codegen_flags: <defaults>
</compile_context>

<pallas_src>
import functools

import jax
import jax.numpy as jnp
from jax import lax
from jax.experimental import pallas as pl
from jax.experimental.pallas import tpu as pltpu


def _round_up(x, m):
    return (x + m - 1) // m * m


def _cdiv(a, b):
    return (a + b - 1) // b


def _default_vmem_limit_bytes():
    """Chip-aware scoped-VMEM budget.

    v3/v4/v5e/v6e have 128 MiB physical VMEM -> raise the scoped limit to
    64 MiB.  v7x (and unknown chips) only have 64 MiB physical -> 48 MiB.
    """
    try:
        kind = jax.devices()[0].device_kind.lower()
    except Exception:  # pragma: no cover
        kind = ""
    if any(v in kind for v in ("v3", "v4", "v5", "v6")):
        return 64 * 1024 * 1024
    return 48 * 1024 * 1024


def _pick_tn(n):
    """Lane-dense N tile when N is a multiple of 128, else the full dim
    (a full-dim block is always a legal block shape)."""
    if n % 128 == 0:
        for c in (512, 256, 128):
            if n % c == 0:
                return c
    return n


def _pick_tm(k, tn, x_bytes, w_bytes, out_bytes, budget_bytes):
    """Largest M tile whose double-buffered footprint fits the VMEM budget."""
    for tm in (512, 256, 128, 64, 32, 16, 8):
        foot = 2 * (tm * k * x_bytes      # x blocks (input dtype, no host cast)
                    + k * tn * w_bytes    # W^T blocks
                    + tn * 4              # bias row
                    + tm * tn * out_bytes)  # output blocks
        if foot <= budget_bytes:
            return tm
    return None


def _clamp_tm(m, tm_budget):
    """Clamp the M tile to the problem; keep >=2 M blocks for moderate M so
    both v7x TensorCores get work."""
    if m > tm_budget:
        return tm_budget
    if m > 256:
        return min(tm_budget, _round_up(_cdiv(m, 2), 8))
    return m  # full-dim block (always legal, even when not a multiple of 8)


def _kresident_kernel(x_ref, wt_ref, b_ref, o_ref, *, compute_dtype, precision):
    # x_ref:(tm,K)  wt_ref:(K,tn)  b_ref:(1,tn) f32  o_ref:(tm,tn)
    # Single MXU call per (i, j) tile; cast x in-kernel; f32 accumulate + bias.
    x = x_ref[...].astype(compute_dtype)
    acc = jnp.dot(x, wt_ref[...], preferred_element_type=jnp.float32,
                  precision=precision)
    o_ref[...] = (acc + b_ref[...]).astype(o_ref.dtype)


def _ktiled_kernel(x_ref, wt_ref, b_ref, o_ref, acc_ref, *, compute_dtype,
                   precision):
    # Fallback for very large input_size: K-tiled accumulator GEMM.
    k = pl.program_id(2)

    @pl.when(k == 0)
    def _():
        acc_ref[...] = jnp.zeros_like(acc_ref)

    acc_ref[...] += jnp.dot(x_ref[...].astype(compute_dtype), wt_ref[...],
                            preferred_element_type=jnp.float32,
                            precision=precision)

    @pl.when(k == pl.num_programs(2) - 1)
    def _():
        o_ref[...] = (acc_ref[...] + b_ref[...]).astype(o_ref.dtype)


def linear_pallas(x2d, wt, b_row, *, compute_dtype=jnp.bfloat16, out_dtype=None,
                  vmem_limit_bytes=None):
    """y = x2d @ W^T + b.

    x2d:   (M, K) activations (f32 or bf16; cast to `compute_dtype` in-kernel).
    wt:    (K, N) pre-transposed weight already in `compute_dtype` (unpadded).
    b_row: (1, N) f32 bias.
    Returns (M, N) in `out_dtype` (default: x2d.dtype).
    """
    M, K = x2d.shape
    Kw, N = wt.shape
    assert Kw == K and b_row.shape == (1, N)
    if out_dtype is None:
        out_dtype = x2d.dtype
    if vmem_limit_bytes is None:
        vmem_limit_bytes = _default_vmem_limit_bytes()
    budget = (vmem_limit_bytes * 3) // 4

    precision = (lax.Precision.HIGHEST
                 if jnp.dtype(compute_dtype) == jnp.dtype(jnp.float32) else None)
    x_bytes = jnp.dtype(x2d.dtype).itemsize
    w_bytes = jnp.dtype(wt.dtype).itemsize
    o_bytes = jnp.dtype(out_dtype).itemsize

    tn = _pick_tn(N)
    tm_budget = _pick_tm(K, tn, x_bytes, w_bytes, o_bytes, budget)

    if tm_budget is not None:
        # Fast path: whole contraction dim resident in VMEM. x is read once,
        # W once per N panel; no accumulator scratch, no host pad/cast/slice.
        tm = _clamp_tm(M, tm_budget)
        grid = (_cdiv(M, tm), _cdiv(N, tn))
        kernel = functools.partial(_kresident_kernel,
                                   compute_dtype=compute_dtype,
                                   precision=precision)
        return pl.pallas_call(
            kernel,
            out_shape=jax.ShapeDtypeStruct((M, N), out_dtype),
            grid_spec=pltpu.PrefetchScalarGridSpec(
                num_scalar_prefetch=0,
                grid=grid,
                in_specs=[
                    pl.BlockSpec((tm, K), lambda i, j: (i, 0)),   # x row panel
                    pl.BlockSpec((K, tn), lambda i, j: (0, j)),   # W^T col panel
                    pl.BlockSpec((1, tn), lambda i, j: (0, j)),   # bias row
                ],
                out_specs=pl.BlockSpec((tm, tn), lambda i, j: (i, j)),
            ),
            compiler_params=pltpu.CompilerParams(
                dimension_semantics=("parallel", "parallel"),
                vmem_limit_bytes=vmem_limit_bytes,
            ),
        )(x2d, wt, b_row)

    # Fallback (huge input_size): K-tiled accumulator GEMM.  The only host-side
    # copy is a zero-pad of K up to a 128 multiple, and only when K is not
    # already 128-aligned (rare for large K).
    Kp = _round_up(K, 128)
    tk = next(c for c in (1024, 512, 256, 128) if Kp % c == 0)
    tm_budget = _pick_tm(tk, tn, x_bytes, w_bytes, o_bytes, budget)
    tm = _clamp_tm(M, tm_budget)
    x_p = x2d if Kp == K else jnp.pad(x2d, ((0, 0), (0, Kp - K)))
    wt_p = wt if Kp == K else jnp.pad(wt, ((0, Kp - K), (0, 0)))
    grid = (_cdiv(M, tm), _cdiv(N, tn), Kp // tk)
    kernel = functools.partial(_ktiled_kernel, compute_dtype=compute_dtype,
                               precision=precision)
    return pl.pallas_call(
        kernel,
        out_shape=jax.ShapeDtypeStruct((M, N), out_dtype),
        grid_spec=pltpu.PrefetchScalarGridSpec(
            num_scalar_prefetch=0,
            grid=grid,
            in_specs=[
                pl.BlockSpec((tm, tk), lambda i, j, k: (i, k)),
                pl.BlockSpec((tk, tn), lambda i, j, k: (k, j)),
                pl.BlockSpec((1, tn), lambda i, j, k: (0, j)),
            ],
            out_specs=pl.BlockSpec((tm, tn), lambda i, j, k: (i, j)),
            scratch_shapes=[pltpu.VMEM((tm, tn), jnp.float32)],
        ),
        compiler_params=pltpu.CompilerParams(
            dimension_semantics=("parallel", "parallel", "arbitrary"),
            vmem_limit_bytes=vmem_limit_bytes,
        ),
    )(x_p, wt_p, b_row)


class FrameEncoderPallas:
    """JAX/Pallas port of FrameEncoder: Linear(input_size -> hidden_size)."""

    def __init__(self, trunk_params, key, compute_dtype=jnp.bfloat16,
                 out_dtype=None):
        in_f = trunk_params["input_size"]
        out_f = trunk_params["hidden_size"]
        self.in_features = in_f
        self.out_features = out_f
        self.compute_dtype = compute_dtype
        self.out_dtype = out_dtype  # None -> match input dtype (f32 semantics)

        k_w, k_b = jax.random.split(key)
        # Deterministic init matching torch.nn.Linear's U(-1/sqrt(in), 1/sqrt(in)).
        bound = 1.0 / (in_f ** 0.5)
        self.weight = jax.random.uniform(
            k_w, (out_f, in_f), jnp.float32, minval=-bound, maxval=bound)
        self.bias = jax.random.uniform(
            k_b, (out_f,), jnp.float32, minval=-bound, maxval=bound)

        # Pre-transpose / pre-cast ONCE.  No K/N padding: the kernel works on
        # the exact dims with masked partial tiles, so the forward pass has no
        # per-call pad, cast or output-slice HBM traffic.
        self.wt = self.weight.T.astype(compute_dtype)                 # (K, N)
        self.b_row = self.bias.reshape(1, out_f).astype(jnp.float32)  # (1, N)

    def _apply(self, x):
        lead = x.shape[:-1]
        x2d = x.reshape(-1, x.shape[-1])
        y2d = linear_pallas(x2d, self.wt, self.b_row,
                            compute_dtype=self.compute_dtype,
                            out_dtype=self.out_dtype)
        return y2d.reshape(*lead, self.out_features)

    def __call__(self, x):
        if isinstance(x, list):
            # One pallas_call per video: rows are independent and the weight
            # stays hot in HBM, so no concat / per-video slice copies.
            # TODO(synk): torch.nn.utils.rnn.pack_sequence (PackedSequence) has
            # no JAX/Pallas equivalent; return the list of encoded videos.
            return [self._apply(v) for v in x]
        return self._apply(x)


if __name__ == "__main__":
    key = jax.random.PRNGKey(0)
    trunk_params = {"input_size": 32, "hidden_size": 32}
    enc = FrameEncoderPallas(trunk_params, key)  # bf16 MXU path (default)

    # Tensor path: x of shape (batch=2, seq=8, input_size=32).
    x = jax.random.normal(jax.random.PRNGKey(1), (2, 8, 32), jnp.float32)
    y = jax.block_until_ready(enc(x))
    assert y.shape == (2, 8, 32) and y.dtype == jnp.float32

    # Reference with the same bf16 rounding of x/W (f32 accumulate + f32 bias).
    wr = enc.weight.T.astype(jnp.bfloat16).astype(jnp.float32)
    xr = x.astype(jnp.bfloat16).astype(jnp.float32)
    y_ref_bf16 = xr @ wr + enc.bias
    assert jnp.allclose(y, y_ref_bf16, atol=1e-3, rtol=1e-3)

    # Also within normal mixed-precision tolerance of the true-f32 reference.
    y_ref_f32 = (jnp.dot(x.reshape(-1, 32), enc.weight.T,
                         precision=lax.Precision.HIGHEST)
                 .reshape(2, 8, 32) + enc.bias)
    assert jnp.allclose(y, y_ref_f32, atol=5e-2, rtol=5e-2)

    # Full-f32 compute path (precision=HIGHEST in-kernel) matches tightly.
    enc32 = FrameEncoderPallas(trunk_params, key, compute_dtype=jnp.float32)
    y32 = jax.block_until_ready(enc32(x))
    assert jnp.allclose(y32, y_ref_f32, atol=1e-5, rtol=1e-5)

    # List path: ragged "videos" -> one pallas_call per video, list of outputs.
    vids = [
        jax.random.normal(jax.random.PRNGKey(2), (8, 32), jnp.float32),
        jax.random.normal(jax.random.PRNGKey(3), (5, 32), jnp.float32),
    ]
    outs = [jax.block_until_ready(o) for o in enc(vids)]
    assert outs[0].shape == (8, 32) and outs[1].shape == (5, 32)
    for v, o in zip(vids, outs):
        vr = v.astype(jnp.bfloat16).astype(jnp.float32)
        assert jnp.allclose(o, vr @ wr + enc.bias, atol=1e-3, rtol=1e-3)

    print("KERNEL_OK")
</pallas_src>

<mosaic_0001>
module attributes {stable_mosaic.version = 11 : i64} {
  func.func @_kresident_kernel(%arg0: i32, %arg1: i32, %arg2: memref<16x32xf32, #tpu.memory_space<vmem>>, %arg3: memref<32x32xbf16, #tpu.memory_space<vmem>>, %arg4: memref<1x32xf32, #tpu.memory_space<vmem>>, %arg5: memref<16x32xf32, #tpu.memory_space<vmem>>) attributes {dimension_semantics = [#tpu.dimension_semantics<parallel>, #tpu.dimension_semantics<parallel>], iteration_bounds = array<i64: 1, 1>, scalar_prefetch = 0 : i64, scratch_operands = 0 : i64, tpu.core_type = #tpu.core_type<tc>, window_params = [{transform_indices = @transform_0, window_bounds = array<i64: 16, 32>}, {transform_indices = @transform_1, window_bounds = array<i64: 32, 32>}, {transform_indices = @transform_2, window_bounds = array<i64: 1, 32>}, {transform_indices = @transform_3, window_bounds = array<i64: 16, 32>}]} {
    %c0 = arith.constant 0 : index
    %c0_0 = arith.constant 0 : index
    %0 = vector.load %arg2[%c0, %c0_0] : memref<16x32xf32, #tpu.memory_space<vmem>>, vector<16x32xf32>
    %1 = arith.truncf %0 : vector<16x32xf32> to vector<16x32xbf16>
    %c0_1 = arith.constant 0 : index
    %c0_2 = arith.constant 0 : index
    %2 = vector.load %arg3[%c0_1, %c0_2] : memref<32x32xbf16, #tpu.memory_space<vmem>>, vector<32x32xbf16>
    %cst = arith.constant dense<0.000000e+00> : vector<16x32xf32>
    %3 = tpu.matmul %1, %2, %cst {dimension_numbers = #tpu.dot_dimension_numbers<[1], [0], [0], [1], [0, 0, 1, 1], [], []>} : vector<16x32xbf16>, vector<32x32xbf16>, vector<16x32xf32> -> vector<16x32xf32>
    %c0_3 = arith.constant 0 : index
    %c0_4 = arith.constant 0 : index
    %4 = vector.load %arg4[%c0_3, %c0_4] : memref<1x32xf32, #tpu.memory_space<vmem>>, vector<1x32xf32>
    %5 = vector.broadcast %4 : vector<1x32xf32> to vector<16x32xf32>
    %6 = arith.addf %3, %5 : vector<16x32xf32>
    %c0_5 = arith.constant 0 : index
    %c0_6 = arith.constant 0 : index
    %7 = vector.load %arg5[%c0_5, %c0_6] : memref<16x32xf32, #tpu.memory_space<vmem>>, vector<16x32xf32>
    tpu.vector_store %arg5[%c0_5, %c0_6], %6 {strides = array<i32>} : memref<16x32xf32, #tpu.memory_space<vmem>>, vector<16x32xf32>,
    return
  }
  func.func @transform_0(%arg0: i32, %arg1: i32) -> (i32, i32) {
    %c0_i32 = arith.constant 0 : i32
    %c0_i32_0 = arith.constant 0 : i32
    return %arg0, %c0_i32 : i32, i32
  }
  func.func @transform_1(%arg0: i32, %arg1: i32) -> (i32, i32) {
    %c0_i32 = arith.constant 0 : i32
    %c0_i32_0 = arith.constant 0 : i32
    return %c0_i32, %arg1 : i32, i32
  }
  func.func @transform_2(%arg0: i32, %arg1: i32) -> (i32, i32) {
    %c0_i32 = arith.constant 0 : i32
    %c0_i32_0 = arith.constant 0 : i32
    return %c0_i32, %arg1 : i32, i32
  }
  func.func @transform_3(%arg0: i32, %arg1: i32) -> (i32, i32) {
    %c0_i32 = arith.constant 0 : i32
    return %arg0, %arg1 : i32, i32
  }
}

</mosaic_0001>

<bundles_post_ra>
// kernel: tpu_custom_call.1
= control target key start
LH: loop header
LB: loop body
LE: loop exit
PB: predicated region body
PF: predicated region fallthrough
CT: control target
= control target key end

     0   :  { %8 = vsyncpa [#allocation3], 0  ;;  %s307_s0 = inlined_call_operand.hbm [shape: f32[16,32], index: 0, kind: input, shape index: {}]   ;;  %s308_s1 = inlined_call_operand.hbm [shape: bf16[32,32], index: 1, kind: input, shape index: {}]   ;;  %s309_s2 = inlined_call_operand.vmem [shape: f32[1,32], index: 2, kind: input, shape index: {}]   ;;  %s310_s3 = inlined_call_operand.hbm [shape: f32[16,32], index: 3, kind: output, shape index: {}]  }
   0x1   :  { %9 = vsyncpa [#allocation6], 0 }
   0x2   :  { %10 = vsyncpa [#allocation4], 0  ;;  %s233_s12 = smov [#allocation2]   ;;  %s161_s16 = scalar_lea.hbm %s307_s0, 256 }
   0x3   :  { %s16_s13 = sshll.u32 %s233_s12, 4  ;;  %p162_p0 = scmp.ne.s32.totalorder %s307_s0, %s161_s16  ;;  %s17_s13 = int_to_ptr.vmem [resolvable:$true] %s16_s13 }
   0x4   :  { %p165_p1 = scmp.lt.u32.totalorder %s161_s16, %s307_s0 }
   0x6   :  { %p167_p2 = pnand %p165_p1, %p162_p0 }
   0x8   :  { %170 = shalt.err (!%p167_p2)
}
   0x9   :  { %s171_s21 = scalar_lea.vmem %s17_s13, 256  ;;  %p176_p4 = scmp.lt.s32.totalorder %s17_s13, %s17_s13 }
   0xa   :  { %p172_p3 = scmp.ne.s32.totalorder %s17_s13, %s171_s21  ;;  %p177_p5 = scmp.lt.s32.totalorder %s171_s21, %s171_s21 }
   0xc   :  { %p178_p6 = por %p177_p5, %p176_p4 }
   0xe   :  { %p179_p7 = pnand %p178_p6, %p172_p3 }
  0x10   :  { %182 = shalt.err (!%p179_p7)
}
  0x11   :  { %s234_s22 = smov 128   ;;  %s235_s23 = smov 8  }
  0x12   :  { %22 = dma.hbm_to_vmem [thread:$0]  %s307_s0, 256, %s17_s13, [#allocation3], %s234_s22, %s234_s22, %s235_s23  }
  0x13   :  { %s236_s26 = smov [#allocation5]   ;;  %s183_s30 = scalar_lea.hbm %s308_s1, 256 }
  0x14   :  { %s28_s27 = sshll.u32 %s236_s26, 4  ;;  %p184_p8 = scmp.ne.s32.totalorder %s308_s1, %s183_s30  ;;  %s29_s27 = int_to_ptr.vmem [resolvable:$true] %s28_s27 }
  0x15   :  { %p187_p9 = scmp.lt.u32.totalorder %s183_s30, %s308_s1 }
  0x17   :  { %p189_p10 = pnand %p187_p9, %p184_p8 }
  0x19   :  { %192 = shalt.err (!%p189_p10)
}
  0x1a   :  { %s193_s8 = scalar_lea.vmem %s29_s27, 256  ;;  %p198_p12 = scmp.lt.s32.totalorder %s29_s27, %s29_s27 }
  0x1b   :  { %p194_p11 = scmp.ne.s32.totalorder %s29_s27, %s193_s8  ;;  %p199_p13 = scmp.lt.s32.totalorder %s193_s8, %s193_s8 }
  0x1d   :  { %p200_p0 = por %p199_p13, %p198_p12 }
  0x1f   :  { %p201_p1 = pnand %p200_p0, %p194_p11 }
  0x21   :  { %204 = shalt.err (!%p201_p1)
}
  0x22   :  { %s237_s0 = smov 64   ;;  %s238_s9 = smov 4  }
  0x23   :  { %34 = dma.hbm_to_vmem [thread:$0]  %s308_s1, 256, %s29_s27, [#allocation6], %s237_s0, %s237_s0, %s238_s9  }
  0x24   :  { %227 = dma.done.wait [#allocation3], 256  }
  0x25   :  { %228 = vsyncadd [#allocation3], 4294967040 }
  0x26   :  { %229 = dma.done.wait [#allocation6], 256  }
  0x27   :  { %230 = vsyncadd [#allocation6], 4294967040  ;;  %v239_v0 = vmov 0.0   ;;  %vm240_vm0 = vmmov 0   ;;  %v159_v1 = vld [vmem:[#allocation5] sm:$0xff]   ;;  %v160_v2 = vld [vmem:[#allocation5 + $0x8] sm:$0xff]  }
  0x28   :  { %142 = vmatprep.subr.bf16.mxu0 %v239_v0  ;;  %146 = vmatprep.mubr.msk.bf16.mxu0 %vm240_vm0, %v239_v0  ;;  %v44_v3 = vld [vmem:[#allocation2] sm:$0xff]  ;;  %v45_v4 = vld [vmem:[#allocation2 + $0x8] sm:$0xff]  ;;  %vm70_vm1 = vcmask 261120   ;;  %s241_s13 = smov [#allocation7]  }
  0x29   :  { %143 = vmatpush3.bf16.msra.mxu0 %v159_v1  ;;  %v46_v5 = vpack.c.bf16 %v45_v4, %v44_v3  ;;  %v135_v6 = vld [vmem:[%s309_s2] ss:$0 sm:$0xff]  ;;  %s122_s14 = sshll.u32 %s241_s13, 4  ;;  %s123_s14 = int_to_ptr.vmem [resolvable:$true] %s122_s14 }
  0x2a   :  { %144 = vmatprep.subr.bf16.mxu0 %v239_v0  ;;  %s205_s15 = scalar_lea.vmem %s123_s14, 256  ;;  %p210_p3 = scmp.lt.s32.totalorder %s123_s14, %s123_s14 }
  0x2b   :  { %p206_p2 = scmp.ne.s32.totalorder %s123_s14, %s205_s15  ;;  %p211_p4 = scmp.lt.s32.totalorder %s205_s15, %s205_s15 }
  0x2d   :  { %145 = vmatpush3.bf16.msra.mxu0 %v160_v2  ;;  %p212_p5 = por %p211_p4, %p210_p3 }
  0x2f   :  { %p213_p6 = pnand %p212_p5, %p206_p2 }
  0x30   :  { %147 = vmatmul.mubr.msk.bf16.vlgmr.msra.gmra.mrb[0].mxu0 %vm70_vm1, %v46_v5 }
 0x103   :  { %v108_v7 = vpop.f32.mrb[0].mxu0 }
 0x104   :  { %v109_v8 = vadd.f32 %v135_v6, %v108_v7  ;;  %v148_v9 = vpop.f32.mrb[1].mxu0 }
 0x105   :  { %v111_v10 = vpop.f32.mrb[2].mxu0 }
 0x106   :  { %115 = vst.msk [vmem:[#allocation7] sm:$0xff] %vm70_vm1, %v109_v8  ;;  %v112_v11 = vadd.f32 %v135_v6, %v111_v10  ;;  %v149_v12 = vpop.f32.mrb[3].mxu0 }
 0x108   :  { %116 = vst.msk [vmem:[#allocation7 + $0x8] sm:$0xff] %vm70_vm1, %v112_v11 }
 0x109   :  { %216 = shalt.err (!%p213_p6)
}
 0x10a   :  { %s217_s17 = scalar_lea.hbm %s310_s3, 256 }
 0x10b   :  { %p218_p7 = scmp.ne.s32.totalorder %s310_s3, %s217_s17  ;;  %p221_p8 = scmp.lt.u32.totalorder %s217_s17, %s310_s3 }
 0x10d   :  { %p223_p9 = pnand %p221_p8, %p218_p7 }
 0x10f   :  { %226 = shalt.err (!%p223_p9)
}
 0x110   :  { %128 = dma.vmem_to_hbm [thread:$0]  %s123_s14, 256, %s310_s3, [#allocation4], %s234_s22, %s234_s22, %s235_s23  }
 0x111   :  { %231 = dma.done.wait [#allocation4], 256  }
 0x112   :  { %232 = vsyncadd [#allocation4], 4294967040 }
 0x113   :  { %132 = vsyncpa [#allocation3], 1 }
 0x114   :  { %133 = vsyncpa [#allocation6], 1 }
 0x115   :  { %134 = vsyncpa [#allocation4], 1 }

</bundles_post_ra>
